<compile_context>
chip_gen: v7x
topology: tpu7x:2x2x1
jax: 0.10.0
libtpu: 0.0.40
codegen_flags: <defaults>
</compile_context>

<pallas_src>
import numpy as np

import jax
import jax.numpy as jnp
from jax.experimental import pallas as pl
from jax.experimental.pallas import tpu as pltpu


# ----------------------------------------------------------------------------
# Deterministic parameter construction (mirrors ExampleModel.__init__ shapes).
# Forward never reads these; built on host (numpy), converted once, outside the
# kernel / forward path.
# ----------------------------------------------------------------------------
def init_example_model_params():
    def _det(shape, scale=0.01, offset=0.0):
        n = int(np.prod(shape))
        return np.arange(n, dtype=np.float32).reshape(shape) * scale + offset

    host_params = {
        "param1": np.ones((1,), np.float32),
        "conv1.weight": _det((4, 3, 1, 1)),      # Conv2d(3, 4, k=1, bias=False)
        "conv2.weight": _det((2, 4, 1, 1)),      # Conv2d(4, 2, k=1)
        "conv2.bias": np.zeros((2,), np.float32),
        "bn.weight": np.ones((2,), np.float32),
        "bn.bias": np.zeros((2,), np.float32),
        "fc.weight": _det((1, 2)),               # Linear(2, 1)
        "fc.bias": np.zeros((1,), np.float32),
        # SubModel
        "sub.param1": np.ones((1,), np.float32),
        "sub.conv1.weight": _det((2, 1, 1, 1)),  # Conv2d(2, 2, k=1, groups=2)
        "sub.conv1.bias": np.zeros((2,), np.float32),
        "sub.gn.weight": np.ones((2,), np.float32),
        "sub.gn.bias": np.zeros((2,), np.float32),
        "sub.fc.weight": _det((2, 2)),           # Linear(2, 2)
        "sub.fc.bias": np.zeros((2,), np.float32),
    }
    return {k: jnp.asarray(v) for k, v in host_params.items()}


# ----------------------------------------------------------------------------
# Pallas kernel: identity pass over the current tile.
# ----------------------------------------------------------------------------
def identity_kernel(x_ref, o_ref):
    o_ref[...] = x_ref[...]


_LANE = 128
_MAX_LANE_W = 32768  # widest lane-dense slab we consider


def _vmem_budget():
    """Per-chip (block_bytes, vmem_limit_bytes).

    Conservative fallback (4 MiB blocks, 32 MiB scoped limit) is safe on v5e
    (128 MiB phys / 16 MiB default), v6e (128 / 32) and v7x (64 / 32).
    With TPU info available: 1/16 of physical VMEM per block (4 double-buffered
    buffers use 1/4 of it) and a scoped limit of half of physical, leaving
    headroom for Mosaic's internal scratch.
    """
    block_bytes = 4 << 20
    vmem_limit = 32 << 20
    try:
        info = pltpu.get_tpu_info()
        cap = int(getattr(info, "vmem_capacity_bytes", 0))
        if cap > 0:
            block_bytes = max(1 << 20, cap // 16)               # 8 MiB v5e/v6e, 4 MiB v7x
            vmem_limit = min(cap, max(32 << 20, cap // 2))      # 64 MiB v5e/v6e, 32 MiB v7x
    except Exception:  # info query unavailable -> keep the safe defaults
        pass
    return block_bytes, vmem_limit


def _pick_lane_width(total):
    """Largest multiple-of-128 divisor of `total` not exceeding _MAX_LANE_W (else None)."""
    w = min(_MAX_LANE_W, (total // _LANE) * _LANE)
    while w >= _LANE:
        if total % w == 0:
            return w
        w -= _LANE
    return None


def _choose_tile_rows(rows, cols, itemsize, block_bytes):
    """Row-tile size: VMEM-budgeted, sublane-aligned, prefers an even divisor of rows."""
    granule = max(8, 32 // max(1, itemsize))          # f32 -> 8, bf16 -> 16, int8 -> 32
    slab_bytes = rows * cols * itemsize

    tile = block_bytes // max(1, cols * itemsize)
    if tile >= rows:
        return rows                                    # whole slab = one full-extent block

    # Big slabs: keep >= 4 grid steps so "parallel" megacore sharding (v7x: 2 TCs)
    # and double-buffering both have work to overlap.
    if slab_bytes >= (8 << 20):
        tile = min(tile, -(-rows // 4))

    # Round to 32 rows when possible (covers bf16/int8 packing), else the dtype granule.
    g = 32 if tile >= 32 else granule
    tile = max(granule, (tile // g) * g)

    # Prefer a tile that divides rows evenly -> no masked trailing block.
    t = tile
    for _ in range(256):
        if t < g:
            break
        if rows % t == 0:
            return min(t, rows)
        t -= g
    return min(tile, rows)


def _identity_copy_2d(x2d):
    """Tiled, pipelined identity copy of a lane-dense 2D slab."""
    rows, cols = x2d.shape
    itemsize = jnp.dtype(x2d.dtype).itemsize
    block_bytes, vmem_limit = _vmem_budget()

    tile_rows = _choose_tile_rows(rows, cols, itemsize, block_bytes)
    grid = (pl.cdiv(rows, tile_rows),)
    nbytes = rows * cols * itemsize

    return pl.pallas_call(
        identity_kernel,
        out_shape=jax.ShapeDtypeStruct((rows, cols), x2d.dtype),
        grid_spec=pl.GridSpec(
            grid=grid,
            in_specs=[pl.BlockSpec((tile_rows, cols), lambda i: (i, 0))],
            out_specs=pl.BlockSpec((tile_rows, cols), lambda i: (i, 0)),
        ),
        compiler_params=pltpu.CompilerParams(
            # "parallel" lets v7x shard row tiles across its 2 TensorCores;
            # neutral on single-TC v5e / v6e.
            dimension_semantics=("parallel",),
            vmem_limit_bytes=vmem_limit,
        ),
        # Pure-bandwidth op: read + write the slab once.
        cost_estimate=pl.CostEstimate(
            flops=0, transcendentals=0, bytes_accessed=2 * nbytes
        ),
    )(x2d)


def example_model_forward(x, params=None, *, allow_identity_shortcut=False):
    """Reproduces ExampleModel.forward(x) == x, with the data pass done in Pallas."""
    del params  # forward() does not use any parameters
    if x.ndim == 0 or x.size == 0:
        return x

    # Optional fast path: for tiny inputs the pallas_call dispatch (+~0.35 µs/step)
    # dwarfs the copy itself; only taken when the caller explicitly opts in.
    if allow_identity_shortcut and x.size * jnp.dtype(x.dtype).itemsize < (64 << 10):
        return x

    orig_shape = x.shape
    total = x.size

    lane_w = _pick_lane_width(total)
    if lane_w is not None:
        # Lane-dense slab: last dim a multiple of 128 -> unmasked full-width stores.
        out2d = _identity_copy_2d(x.reshape(-1, lane_w))
        return out2d.reshape(orig_shape)

    # Fallback: element count has no multiple-of-128 divisor.  Pad the flat view to
    # a lane-dense slab (still tiled/pipelined, never a full-array block), copy,
    # strip the pad.  Keeps stores unmasked and bounds VMEM use on every chip.
    w = _LANE
    for cand in (32768, 16384, 8192, 4096, 2048, 1024, 512, 256, 128):
        if cand <= total:
            w = cand
            break
    padded = -(-total // w) * w
    flat = jnp.pad(x.reshape(-1), (0, padded - total))
    out2d = _identity_copy_2d(flat.reshape(-1, w))
    return out2d.reshape(-1)[:total].reshape(orig_shape)


if __name__ == "__main__":
    key = jax.random.PRNGKey(0)
    # NCHW input consistent with conv1 = Conv2d(3, 4, kernel_size=1): 3 channels.
    # 2*3*16*16 = 1536 elements -> lane-dense (1, 1536) slab inside the kernel.
    x = jax.random.normal(key, (2, 3, 16, 16), dtype=jnp.float32)

    params = init_example_model_params()  # outside the forward/benchmark path

    y = example_model_forward(x, params)
    y = jax.block_until_ready(y)

    assert y.shape == x.shape and y.dtype == x.dtype
    assert bool(jnp.all(y == x))
    print("KERNEL_OK")
</pallas_src>

<mosaic_0001>
module attributes {stable_mosaic.version = 11 : i64} {
  func.func @identity_kernel(%arg0: i32, %arg1: memref<1x1536xf32, #tpu.memory_space<vmem>>, %arg2: memref<1x1536xf32, #tpu.memory_space<vmem>>) attributes {dimension_semantics = [#tpu.dimension_semantics<parallel>], iteration_bounds = array<i64: 1>, scalar_prefetch = 0 : i64, scratch_operands = 0 : i64, tpu.core_type = #tpu.core_type<tc>, window_params = [{transform_indices = @transform_0, window_bounds = array<i64: 1, 1536>}, {transform_indices = @transform_1, window_bounds = array<i64: 1, 1536>}]} {
    %c0 = arith.constant 0 : index
    %c0_0 = arith.constant 0 : index
    %0 = vector.load %arg1[%c0, %c0_0] : memref<1x1536xf32, #tpu.memory_space<vmem>>, vector<1x1536xf32>
    %c0_1 = arith.constant 0 : index
    %c0_2 = arith.constant 0 : index
    %1 = vector.load %arg2[%c0_1, %c0_2] : memref<1x1536xf32, #tpu.memory_space<vmem>>, vector<1x1536xf32>
    tpu.vector_store %arg2[%c0_1, %c0_2], %0 {strides = array<i32>} : memref<1x1536xf32, #tpu.memory_space<vmem>>, vector<1x1536xf32>,
    return
  }
  func.func @transform_0(%arg0: i32) -> (i32, i32) {
    %c0_i32 = arith.constant 0 : i32
    %c0_i32_0 = arith.constant 0 : i32
    return %arg0, %c0_i32 : i32, i32
  }
  func.func @transform_1(%arg0: i32) -> (i32, i32) {
    %c0_i32 = arith.constant 0 : i32
    %c0_i32_0 = arith.constant 0 : i32
    return %arg0, %c0_i32 : i32, i32
  }
}

</mosaic_0001>

<bundles_post_ra>
// kernel: tpu_custom_call.1
= control target key start
LH: loop header
LB: loop body
LE: loop exit
PB: predicated region body
PF: predicated region fallthrough
CT: control target
= control target key end

     0   :  { %6 = vsyncpa [#allocation3], 0  ;;  %s130_s0 = inlined_call_operand.hbm [shape: f32[1,1536], index: 0, kind: input, shape index: {}]   ;;  %s131_s1 = inlined_call_operand.hbm [shape: f32[1,1536], index: 1, kind: output, shape index: {}]  }
   0x1   :  { %7 = vsyncpa [#allocation4], 0  ;;  %s94_s6 = smov [#allocation2]   ;;  %s46_s10 = scalar_lea.hbm %s130_s0, 192 }
   0x2   :  { %s14_s7 = sshll.u32 %s94_s6, 4  ;;  %p47_p0 = scmp.ne.s32.totalorder %s130_s0, %s46_s10  ;;  %s15_s7 = int_to_ptr.vmem [resolvable:$true] %s14_s7 }
   0x3   :  { %p50_p1 = scmp.lt.u32.totalorder %s46_s10, %s130_s0 }
   0x5   :  { %p52_p2 = pnand %p50_p1, %p47_p0 }
   0x7   :  { %55 = shalt.err (!%p52_p2)
}
   0x8   :  { %s56_s15 = scalar_lea.vmem %s15_s7, 192  ;;  %p61_p4 = scmp.lt.s32.totalorder %s15_s7, %s15_s7 }
   0x9   :  { %p57_p3 = scmp.ne.s32.totalorder %s15_s7, %s56_s15  ;;  %p62_p5 = scmp.lt.s32.totalorder %s56_s15, %s56_s15 }
   0xb   :  { %p63_p6 = por %p62_p5, %p61_p4 }
   0xd   :  { %p64_p7 = pnand %p63_p6, %p57_p3 }
   0xf   :  { %67 = shalt.err (!%p64_p7)
}
  0x10   :  { %17 = dma.hbm_to_vmem [thread:$0]  %s130_s0, 192, %s15_s7, [#allocation3]  }
  0x11   :  { %90 = dma.done.wait [#allocation3], 192  }
  0x12   :  { %91 = vsyncadd [#allocation3], 4294967104  ;;  %v24_v0 = vlaneseq  ;;  %s95_s18 = smov [#allocation5]   ;;  %v21_v1 = vld [vmem:[#allocation2] sm:$0xff]  ;;  %v22_v2 = vld [vmem:[#allocation2 + $0x8] sm:$0xf] }
  0x13   :  { %s35_s19 = sshll.u32 %s95_s18, 4  ;;  %23 = vst [vmem:[#allocation5] sm:$0xff] %v21_v1  ;;  %s36_s19 = int_to_ptr.vmem [resolvable:$true] %s35_s19 }
  0x14   :  { %vm26_vm0 = vcmp.lt.s32.totalorder %v24_v0, 512  ;;  %s68_s20 = scalar_lea.vmem %s36_s19, 192  ;;  %p73_p9 = scmp.lt.s32.totalorder %s36_s19, %s36_s19 }
  0x15   :  { %28 = vst.msk [vmem:[#allocation5 + $0x8] sm:$0xf] %vm26_vm0, %v22_v2  ;;  %p69_p8 = scmp.ne.s32.totalorder %s36_s19, %s68_s20  ;;  %p74_p10 = scmp.lt.s32.totalorder %s68_s20, %s68_s20 }
  0x17   :  { %p75_p11 = por %p74_p10, %p73_p9 }
  0x19   :  { %p76_p12 = pnand %p75_p11, %p69_p8 }
  0x1b   :  { %79 = shalt.err (!%p76_p12)
}
  0x1c   :  { %s80_s22 = scalar_lea.hbm %s131_s1, 192 }
  0x1d   :  { %p81_p13 = scmp.ne.s32.totalorder %s131_s1, %s80_s22  ;;  %p84_p0 = scmp.lt.u32.totalorder %s80_s22, %s131_s1 }
  0x1f   :  { %p86_p1 = pnand %p84_p0, %p81_p13 }
  0x21   :  { %89 = shalt.err (!%p86_p1)
}
  0x22   :  { %38 = dma.vmem_to_hbm [thread:$0]  %s36_s19, 192, %s131_s1, [#allocation4]  }
  0x23   :  { %92 = dma.done.wait [#allocation4], 192  }
  0x24   :  { %93 = vsyncadd [#allocation4], 4294967104 }
  0x25   :  { %42 = vsyncpa [#allocation3], 1 }
  0x26   :  { %43 = vsyncpa [#allocation4], 1 }

</bundles_post_ra>
